<compile_context>
chip_gen: v7x
topology: tpu7x:2x2x1
jax: 0.10.0
libtpu: 0.0.40
codegen_flags: <defaults>
</compile_context>

<pallas_src>
import math

import jax
import jax.numpy as jnp
from jax.experimental import pallas as pl
from jax.experimental.pallas import tpu as pltpu


# ----------------------------------------------------------------------------
# Fused CA kernel: one grid step = one batch element.
#   x_ref   : (1, C, H*W)  flattened NCHW input
#   pth_ref : (H*W, H)     pooling matrix  (mean over W)           -> MXU
#   ptw_ref : (H*W, W)     pooling matrix  (mean over H)           -> MXU
#   eh_ref  : (H, H*W)     0/1 expansion  a_h[c,h] -> (c, h*W+w)   -> MXU
#   ew_ref  : (W, H*W)     0/1 expansion  a_w[c,w] -> (c, h*W+w)   -> MXU
#   w1_ref  : (MIP, C)     conv1 weight with BN folded in
#   b1_ref  : (MIP, 1)     conv1 bias with BN folded in
#   wh_ref  : (C, MIP), bh_ref : (C, 1)   conv_h
#   ww_ref  : (C, MIP), bw_ref : (C, 1)   conv_w
#   o_ref   : (1, C, H*W)
# ----------------------------------------------------------------------------
def _ca_kernel(x_ref, pth_ref, ptw_ref, eh_ref, ew_ref,
               w1_ref, b1_ref, wh_ref, bh_ref, ww_ref, bw_ref,
               o_ref):
    xf = x_ref[0]                                                        # (C, HW)

    # Directional average pools as MXU contractions.
    ph = jnp.dot(xf, pth_ref[...], preferred_element_type=jnp.float32)   # (C, H)
    pw = jnp.dot(xf, ptw_ref[...], preferred_element_type=jnp.float32)   # (C, W)

    # conv1 (BN folded) + h_swish, applied position-wise (== conv on the
    # concatenated [pool_h; pool_w] tensor, since everything is 1x1 / per-pos).
    yh = jnp.dot(w1_ref[...], ph, preferred_element_type=jnp.float32) + b1_ref[...]  # (MIP, H)
    yw = jnp.dot(w1_ref[...], pw, preferred_element_type=jnp.float32) + b1_ref[...]  # (MIP, W)
    yh = yh * (jnp.clip(yh + 3.0, 0.0, 6.0) * (1.0 / 6.0))
    yw = yw * (jnp.clip(yw + 3.0, 0.0, 6.0) * (1.0 / 6.0))

    # conv_h / conv_w + sigmoid.
    a_h = jax.nn.sigmoid(
        jnp.dot(wh_ref[...], yh, preferred_element_type=jnp.float32) + bh_ref[...])  # (C, H)
    a_w = jax.nn.sigmoid(
        jnp.dot(ww_ref[...], yw, preferred_element_type=jnp.float32) + bw_ref[...])  # (C, W)

    # Broadcast the gates back to (C, H*W) on the MXU (keeps lanes dense).
    ah_full = jnp.dot(a_h, eh_ref[...], preferred_element_type=jnp.float32)  # (C, HW)
    aw_full = jnp.dot(a_w, ew_ref[...], preferred_element_type=jnp.float32)  # (C, HW)

    # out = identity * a_w * a_h   (lane-dense store, last dim = H*W)
    o_ref[0] = xf * (ah_full * aw_full)


# ----------------------------------------------------------------------------
# Wrapper: NCHW in / NCHW out (PyTorch layout). Only free reshapes host-side.
# ----------------------------------------------------------------------------
def ca_forward(x, params, eps=1e-5):
    w1, b1, gamma, beta, rmean, rvar, wh, bh, ww, bw = params
    N, C, H, W = x.shape
    MIP = w1.shape[0]
    HW = H * W

    # Fold eval-mode BatchNorm into conv1.
    scale = gamma / jnp.sqrt(rvar + eps)                     # (MIP,)
    w1eff = (w1 * scale[:, None]).astype(jnp.float32)        # (MIP, C)
    b1eff = ((b1 - rmean) * scale + beta).reshape(MIP, 1).astype(jnp.float32)

    # Constant pooling / expansion matrices (built once per trace).
    idx = jnp.arange(HW)
    row = idx // W
    col = idx % W
    pth = (row[:, None] == jnp.arange(H)[None, :]).astype(jnp.float32) / W   # (HW, H)
    ptw = (col[:, None] == jnp.arange(W)[None, :]).astype(jnp.float32) / H   # (HW, W)
    eh = pth.T * W                                                           # (H, HW) 0/1
    ew = ptw.T * H                                                           # (W, HW) 0/1

    xf = x.reshape(N, C, HW).astype(jnp.float32)             # free reshape

    out = pl.pallas_call(
        _ca_kernel,
        out_shape=jax.ShapeDtypeStruct((N, C, HW), jnp.float32),
        grid=(N,),
        in_specs=[
            pl.BlockSpec((1, C, HW), lambda n: (n, 0, 0)),
            pl.BlockSpec((HW, H), lambda n: (0, 0)),
            pl.BlockSpec((HW, W), lambda n: (0, 0)),
            pl.BlockSpec((H, HW), lambda n: (0, 0)),
            pl.BlockSpec((W, HW), lambda n: (0, 0)),
            pl.BlockSpec((MIP, C), lambda n: (0, 0)),
            pl.BlockSpec((MIP, 1), lambda n: (0, 0)),
            pl.BlockSpec((C, MIP), lambda n: (0, 0)),
            pl.BlockSpec((C, 1), lambda n: (0, 0)),
            pl.BlockSpec((C, MIP), lambda n: (0, 0)),
            pl.BlockSpec((C, 1), lambda n: (0, 0)),
        ],
        out_specs=pl.BlockSpec((1, C, HW), lambda n: (n, 0, 0)),
        compiler_params=pltpu.CompilerParams(dimension_semantics=("parallel",)),
    )(xf, pth, ptw, eh, ew,
      w1eff, b1eff,
      wh.astype(jnp.float32), bh.reshape(C, 1).astype(jnp.float32),
      ww.astype(jnp.float32), bw.reshape(C, 1).astype(jnp.float32))

    return out.reshape(N, C, H, W)                           # free reshape


# ----------------------------------------------------------------------------
# Pure-JAX reference (mirrors the PyTorch CA.forward, eval-mode BN).
# ----------------------------------------------------------------------------
def reference_forward(x, params, eps=1e-5):
    w1, b1, gamma, beta, rmean, rvar, wh, bh, ww, bw = params
    N, C, H, W = x.shape
    x = x.astype(jnp.float32)
    x_h = x.mean(axis=3)                                     # (N, C, H)  pool over W
    x_w = x.mean(axis=2)                                     # (N, C, W)  pool over H
    y = jnp.concatenate([x_h, x_w], axis=2)                  # (N, C, H+W)
    y = jnp.einsum('mc,ncp->nmp', w1, y) + b1[None, :, None]
    y = (y - rmean[None, :, None]) * (gamma / jnp.sqrt(rvar + eps))[None, :, None] \
        + beta[None, :, None]
    y = y * (jnp.clip(y + 3.0, 0.0, 6.0) * (1.0 / 6.0))      # h_swish
    yh, yw = y[:, :, :H], y[:, :, H:]
    a_h = jax.nn.sigmoid(jnp.einsum('cm,nmh->nch', wh, yh) + bh[None, :, None])
    a_w = jax.nn.sigmoid(jnp.einsum('cm,nmw->ncw', ww, yw) + bw[None, :, None])
    return x * a_h[:, :, :, None] * a_w[:, :, None, :]


if __name__ == "__main__":
    key = jax.random.PRNGKey(0)
    N, C, H, W = 2, 64, 16, 16
    reduction = 32
    MIP = max(8, C // reduction)

    keys = jax.random.split(key, 11)
    x = jax.random.normal(keys[0], (N, C, H, W), jnp.float32)
    w1 = jax.random.normal(keys[1], (MIP, C), jnp.float32) * (1.0 / math.sqrt(C))
    b1 = jax.random.normal(keys[2], (MIP,), jnp.float32) * 0.1
    gamma = 1.0 + 0.1 * jax.random.normal(keys[3], (MIP,), jnp.float32)
    beta = 0.1 * jax.random.normal(keys[4], (MIP,), jnp.float32)
    rmean = 0.1 * jax.random.normal(keys[5], (MIP,), jnp.float32)
    rvar = jax.random.uniform(keys[6], (MIP,), jnp.float32, minval=0.5, maxval=1.5)
    wh = jax.random.normal(keys[7], (C, MIP), jnp.float32) * (1.0 / math.sqrt(MIP))
    bh = jax.random.normal(keys[8], (C,), jnp.float32) * 0.1
    ww = jax.random.normal(keys[9], (C, MIP), jnp.float32) * (1.0 / math.sqrt(MIP))
    bw = jax.random.normal(keys[10], (C,), jnp.float32) * 0.1
    params = (w1, b1, gamma, beta, rmean, rvar, wh, bh, ww, bw)

    out = ca_forward(x, params)
    out = jax.block_until_ready(out)

    ref = reference_forward(x, params)
    assert out.shape == ref.shape, (out.shape, ref.shape)
    err = float(jnp.max(jnp.abs(out - ref)))
    assert jnp.allclose(out, ref, atol=1e-4, rtol=1e-4), err

    print("KERNEL_OK")
</pallas_src>

<mosaic_0001>
module attributes {stable_mosaic.version = 11 : i64} {
  func.func @_ca_kernel(%arg0: i32, %arg1: memref<1x64x256xf32, #tpu.memory_space<vmem>>, %arg2: memref<256x16xf32, #tpu.memory_space<vmem>>, %arg3: memref<256x16xf32, #tpu.memory_space<vmem>>, %arg4: memref<16x256xf32, #tpu.memory_space<vmem>>, %arg5: memref<16x256xf32, #tpu.memory_space<vmem>>, %arg6: memref<8x64xf32, #tpu.memory_space<vmem>>, %arg7: memref<8x1xf32, #tpu.memory_space<vmem>>, %arg8: memref<64x8xf32, #tpu.memory_space<vmem>>, %arg9: memref<64x1xf32, #tpu.memory_space<vmem>>, %arg10: memref<64x8xf32, #tpu.memory_space<vmem>>, %arg11: memref<64x1xf32, #tpu.memory_space<vmem>>, %arg12: memref<1x64x256xf32, #tpu.memory_space<vmem>>) attributes {dimension_semantics = [#tpu.dimension_semantics<parallel>], iteration_bounds = array<i64: 2>, scalar_prefetch = 0 : i64, scratch_operands = 0 : i64, tpu.core_type = #tpu.core_type<tc>, window_params = [{transform_indices = @transform_0, window_bounds = array<i64: 1, 64, 256>}, {pipeline_mode = #tpu.pipeline_mode<synchronous>, transform_indices = @transform_1, window_bounds = array<i64: 256, 16>}, {pipeline_mode = #tpu.pipeline_mode<synchronous>, transform_indices = @transform_2, window_bounds = array<i64: 256, 16>}, {pipeline_mode = #tpu.pipeline_mode<synchronous>, transform_indices = @transform_3, window_bounds = array<i64: 16, 256>}, {pipeline_mode = #tpu.pipeline_mode<synchronous>, transform_indices = @transform_4, window_bounds = array<i64: 16, 256>}, {pipeline_mode = #tpu.pipeline_mode<synchronous>, transform_indices = @transform_5, window_bounds = array<i64: 8, 64>}, {pipeline_mode = #tpu.pipeline_mode<synchronous>, transform_indices = @transform_6, window_bounds = array<i64: 8, 1>}, {pipeline_mode = #tpu.pipeline_mode<synchronous>, transform_indices = @transform_7, window_bounds = array<i64: 64, 8>}, {pipeline_mode = #tpu.pipeline_mode<synchronous>, transform_indices = @transform_8, window_bounds = array<i64: 64, 1>}, {pipeline_mode = #tpu.pipeline_mode<synchronous>, transform_indices = @transform_9, window_bounds = array<i64: 64, 8>}, {pipeline_mode = #tpu.pipeline_mode<synchronous>, transform_indices = @transform_10, window_bounds = array<i64: 64, 1>}, {transform_indices = @transform_11, window_bounds = array<i64: 1, 64, 256>}]} {
    %c0 = arith.constant 0 : index
    %c0_0 = arith.constant 0 : index
    %c0_1 = arith.constant 0 : index
    %0 = vector.load %arg1[%c0, %c0_0, %c0_1] : memref<1x64x256xf32, #tpu.memory_space<vmem>>, vector<1x64x256xf32>
    %1 = vector.shape_cast %0 : vector<1x64x256xf32> to vector<64x256xf32>
    %c0_2 = arith.constant 0 : index
    %c0_3 = arith.constant 0 : index
    %2 = vector.load %arg2[%c0_2, %c0_3] : memref<256x16xf32, #tpu.memory_space<vmem>>, vector<256x16xf32>
    %cst = arith.constant dense<0.000000e+00> : vector<64x16xf32>
    %3 = tpu.matmul %1, %2, %cst {dimension_numbers = #tpu.dot_dimension_numbers<[1], [0], [0], [1], [0, 0, 1, 1], [], []>} : vector<64x256xf32>, vector<256x16xf32>, vector<64x16xf32> -> vector<64x16xf32>
    %c0_4 = arith.constant 0 : index
    %c0_5 = arith.constant 0 : index
    %4 = vector.load %arg3[%c0_4, %c0_5] : memref<256x16xf32, #tpu.memory_space<vmem>>, vector<256x16xf32>
    %cst_6 = arith.constant dense<0.000000e+00> : vector<64x16xf32>
    %5 = tpu.matmul %1, %4, %cst_6 {dimension_numbers = #tpu.dot_dimension_numbers<[1], [0], [0], [1], [0, 0, 1, 1], [], []>} : vector<64x256xf32>, vector<256x16xf32>, vector<64x16xf32> -> vector<64x16xf32>
    %c0_7 = arith.constant 0 : index
    %c0_8 = arith.constant 0 : index
    %6 = vector.load %arg6[%c0_7, %c0_8] : memref<8x64xf32, #tpu.memory_space<vmem>>, vector<8x64xf32>
    %cst_9 = arith.constant dense<0.000000e+00> : vector<8x16xf32>
    %7 = tpu.matmul %6, %3, %cst_9 {dimension_numbers = #tpu.dot_dimension_numbers<[1], [0], [0], [1], [0, 0, 1, 1], [], []>} : vector<8x64xf32>, vector<64x16xf32>, vector<8x16xf32> -> vector<8x16xf32>
    %c0_10 = arith.constant 0 : index
    %c0_11 = arith.constant 0 : index
    %8 = vector.load %arg7[%c0_10, %c0_11] : memref<8x1xf32, #tpu.memory_space<vmem>>, vector<8x1xf32>
    %9 = vector.broadcast %8 : vector<8x1xf32> to vector<8x16xf32>
    %10 = arith.addf %7, %9 : vector<8x16xf32>
    %c0_12 = arith.constant 0 : index
    %c0_13 = arith.constant 0 : index
    %11 = vector.load %arg6[%c0_12, %c0_13] : memref<8x64xf32, #tpu.memory_space<vmem>>, vector<8x64xf32>
    %cst_14 = arith.constant dense<0.000000e+00> : vector<8x16xf32>
    %12 = tpu.matmul %11, %5, %cst_14 {dimension_numbers = #tpu.dot_dimension_numbers<[1], [0], [0], [1], [0, 0, 1, 1], [], []>} : vector<8x64xf32>, vector<64x16xf32>, vector<8x16xf32> -> vector<8x16xf32>
    %c0_15 = arith.constant 0 : index
    %c0_16 = arith.constant 0 : index
    %13 = vector.load %arg7[%c0_15, %c0_16] : memref<8x1xf32, #tpu.memory_space<vmem>>, vector<8x1xf32>
    %14 = vector.broadcast %13 : vector<8x1xf32> to vector<8x16xf32>
    %15 = arith.addf %12, %14 : vector<8x16xf32>
    %cst_17 = arith.constant 3.000000e+00 : f32
    %16 = vector.broadcast %cst_17 : f32 to vector<8x16xf32>
    %17 = arith.addf %10, %16 : vector<8x16xf32>
    %cst_18 = arith.constant 0.000000e+00 : f32
    %cst_19 = arith.constant 6.000000e+00 : f32
    %18 = vector.broadcast %cst_18 : f32 to vector<8x16xf32>
    %19 = arith.maximumf %18, %17 : vector<8x16xf32>
    %20 = vector.broadcast %cst_19 : f32 to vector<8x16xf32>
    %21 = arith.minimumf %20, %19 : vector<8x16xf32>
    %cst_20 = arith.constant 0.166666672 : f32
    %22 = vector.broadcast %cst_20 : f32 to vector<8x16xf32>
    %23 = arith.mulf %21, %22 : vector<8x16xf32>
    %24 = arith.mulf %10, %23 : vector<8x16xf32>
    %cst_21 = arith.constant 3.000000e+00 : f32
    %25 = vector.broadcast %cst_21 : f32 to vector<8x16xf32>
    %26 = arith.addf %15, %25 : vector<8x16xf32>
    %cst_22 = arith.constant 0.000000e+00 : f32
    %cst_23 = arith.constant 6.000000e+00 : f32
    %27 = vector.broadcast %cst_22 : f32 to vector<8x16xf32>
    %28 = arith.maximumf %27, %26 : vector<8x16xf32>
    %29 = vector.broadcast %cst_23 : f32 to vector<8x16xf32>
    %30 = arith.minimumf %29, %28 : vector<8x16xf32>
    %cst_24 = arith.constant 0.166666672 : f32
    %31 = vector.broadcast %cst_24 : f32 to vector<8x16xf32>
    %32 = arith.mulf %30, %31 : vector<8x16xf32>
    %33 = arith.mulf %15, %32 : vector<8x16xf32>
    %c0_25 = arith.constant 0 : index
    %c0_26 = arith.constant 0 : index
    %34 = vector.load %arg8[%c0_25, %c0_26] : memref<64x8xf32, #tpu.memory_space<vmem>>, vector<64x8xf32>
    %cst_27 = arith.constant dense<0.000000e+00> : vector<64x16xf32>
    %35 = tpu.matmul %34, %24, %cst_27 {dimension_numbers = #tpu.dot_dimension_numbers<[1], [0], [0], [1], [0, 0, 1, 1], [], []>} : vector<64x8xf32>, vector<8x16xf32>, vector<64x16xf32> -> vector<64x16xf32>
    %c0_28 = arith.constant 0 : index
    %c0_29 = arith.constant 0 : index
    %36 = vector.load %arg9[%c0_28, %c0_29] : memref<64x1xf32, #tpu.memory_space<vmem>>, vector<64x1xf32>
    %37 = vector.broadcast %36 : vector<64x1xf32> to vector<64x16xf32>
    %38 = arith.addf %35, %37 : vector<64x16xf32>
    %39 = arith.negf %38 : vector<64x16xf32>
    %40 = math.exp %39 : vector<64x16xf32>
    %cst_30 = arith.constant 1.000000e+00 : f32
    %41 = vector.broadcast %cst_30 : f32 to vector<64x16xf32>
    %42 = arith.addf %41, %40 : vector<64x16xf32>
    %43 = arith.divf %41, %42 : vector<64x16xf32>
    %c0_31 = arith.constant 0 : index
    %c0_32 = arith.constant 0 : index
    %44 = vector.load %arg10[%c0_31, %c0_32] : memref<64x8xf32, #tpu.memory_space<vmem>>, vector<64x8xf32>
    %cst_33 = arith.constant dense<0.000000e+00> : vector<64x16xf32>
    %45 = tpu.matmul %44, %33, %cst_33 {dimension_numbers = #tpu.dot_dimension_numbers<[1], [0], [0], [1], [0, 0, 1, 1], [], []>} : vector<64x8xf32>, vector<8x16xf32>, vector<64x16xf32> -> vector<64x16xf32>
    %c0_34 = arith.constant 0 : index
    %c0_35 = arith.constant 0 : index
    %46 = vector.load %arg11[%c0_34, %c0_35] : memref<64x1xf32, #tpu.memory_space<vmem>>, vector<64x1xf32>
    %47 = vector.broadcast %46 : vector<64x1xf32> to vector<64x16xf32>
    %48 = arith.addf %45, %47 : vector<64x16xf32>
    %49 = arith.negf %48 : vector<64x16xf32>
    %50 = math.exp %49 : vector<64x16xf32>
    %cst_36 = arith.constant 1.000000e+00 : f32
    %51 = vector.broadcast %cst_36 : f32 to vector<64x16xf32>
    %52 = arith.addf %51, %50 : vector<64x16xf32>
    %53 = arith.divf %51, %52 : vector<64x16xf32>
    %c0_37 = arith.constant 0 : index
    %c0_38 = arith.constant 0 : index
    %54 = vector.load %arg4[%c0_37, %c0_38] : memref<16x256xf32, #tpu.memory_space<vmem>>, vector<16x256xf32>
    %cst_39 = arith.constant dense<0.000000e+00> : vector<64x256xf32>
    %55 = tpu.matmul %43, %54, %cst_39 {dimension_numbers = #tpu.dot_dimension_numbers<[1], [0], [0], [1], [0, 0, 1, 1], [], []>} : vector<64x16xf32>, vector<16x256xf32>, vector<64x256xf32> -> vector<64x256xf32>
    %c0_40 = arith.constant 0 : index
    %c0_41 = arith.constant 0 : index
    %56 = vector.load %arg5[%c0_40, %c0_41] : memref<16x256xf32, #tpu.memory_space<vmem>>, vector<16x256xf32>
    %cst_42 = arith.constant dense<0.000000e+00> : vector<64x256xf32>
    %57 = tpu.matmul %53, %56, %cst_42 {dimension_numbers = #tpu.dot_dimension_numbers<[1], [0], [0], [1], [0, 0, 1, 1], [], []>} : vector<64x16xf32>, vector<16x256xf32>, vector<64x256xf32> -> vector<64x256xf32>
    %58 = arith.mulf %55, %57 : vector<64x256xf32>
    %59 = arith.mulf %1, %58 : vector<64x256xf32>
    %c0_43 = arith.constant 0 : index
    %c0_44 = arith.constant 0 : index
    %c0_45 = arith.constant 0 : index
    %60 = vector.load %arg12[%c0_43, %c0_44, %c0_45] : memref<1x64x256xf32, #tpu.memory_space<vmem>>, vector<1x64x256xf32>
    %61 = vector.shape_cast %60 : vector<1x64x256xf32> to vector<64x256xf32>
    %62 = vector.shape_cast %59 : vector<64x256xf32> to vector<1x64x256xf32>
    tpu.vector_store %arg12[%c0_43, %c0_44, %c0_45], %62 {strides = array<i32>} : memref<1x64x256xf32, #tpu.memory_space<vmem>>, vector<1x64x256xf32>,
    return
  }
  func.func @transform_0(%arg0: i32) -> (i32, i32, i32) {
    %c0_i32 = arith.constant 0 : i32
    %c0_i32_0 = arith.constant 0 : i32
    %c0_i32_1 = arith.constant 0 : i32
    return %arg0, %c0_i32, %c0_i32_0 : i32, i32, i32
  }
  func.func @transform_1(%arg0: i32) -> (i32, i32) {
    %c0_i32 = arith.constant 0 : i32
    %c0_i32_0 = arith.constant 0 : i32
    %c0_i32_1 = arith.constant 0 : i32
    return %c0_i32, %c0_i32_0 : i32, i32
  }
  func.func @transform_2(%arg0: i32) -> (i32, i32) {
    %c0_i32 = arith.constant 0 : i32
    %c0_i32_0 = arith.constant 0 : i32
    %c0_i32_1 = arith.constant 0 : i32
    return %c0_i32, %c0_i32_0 : i32, i32
  }
  func.func @transform_3(%arg0: i32) -> (i32, i32) {
    %c0_i32 = arith.constant 0 : i32
    %c0_i32_0 = arith.constant 0 : i32
    %c0_i32_1 = arith.constant 0 : i32
    return %c0_i32, %c0_i32_0 : i32, i32
  }
  func.func @transform_4(%arg0: i32) -> (i32, i32) {
    %c0_i32 = arith.constant 0 : i32
    %c0_i32_0 = arith.constant 0 : i32
    %c0_i32_1 = arith.constant 0 : i32
    return %c0_i32, %c0_i32_0 : i32, i32
  }
  func.func @transform_5(%arg0: i32) -> (i32, i32) {
    %c0_i32 = arith.constant 0 : i32
    %c0_i32_0 = arith.constant 0 : i32
    %c0_i32_1 = arith.constant 0 : i32
    return %c0_i32, %c0_i32_0 : i32, i32
  }
  func.func @transform_6(%arg0: i32) -> (i32, i32) {
    %c0_i32 = arith.constant 0 : i32
    %c0_i32_0 = arith.constant 0 : i32
    %c0_i32_1 = arith.constant 0 : i32
    return %c0_i32, %c0_i32_0 : i32, i32
  }
  func.func @transform_7(%arg0: i32) -> (i32, i32) {
    %c0_i32 = arith.constant 0 : i32
    %c0_i32_0 = arith.constant 0 : i32
    %c0_i32_1 = arith.constant 0 : i32
    return %c0_i32, %c0_i32_0 : i32, i32
  }
  func.func @transform_8(%arg0: i32) -> (i32, i32) {
    %c0_i32 = arith.constant 0 : i32
    %c0_i32_0 = arith.constant 0 : i32
    %c0_i32_1 = arith.constant 0 : i32
    return %c0_i32, %c0_i32_0 : i32, i32
  }
  func.func @transform_9(%arg0: i32) -> (i32, i32) {
    %c0_i32 = arith.constant 0 : i32
    %c0_i32_0 = arith.constant 0 : i32
    %c0_i32_1 = arith.constant 0 : i32
    return %c0_i32, %c0_i32_0 : i32, i32
  }
  func.func @transform_10(%arg0: i32) -> (i32, i32) {
    %c0_i32 = arith.constant 0 : i32
    %c0_i32_0 = arith.constant 0 : i32
    %c0_i32_1 = arith.constant 0 : i32
    return %c0_i32, %c0_i32_0 : i32, i32
  }
  func.func @transform_11(%arg0: i32) -> (i32, i32, i32) {
    %c0_i32 = arith.constant 0 : i32
    %c0_i32_0 = arith.constant 0 : i32
    %c0_i32_1 = arith.constant 0 : i32
    return %arg0, %c0_i32, %c0_i32_0 : i32, i32, i32
  }
}

</mosaic_0001>

<bundles_post_ra>
// kernel: tpu_custom_call.1
= control target key start
LH: loop header
LB: loop body
LE: loop exit
PB: predicated region body
PF: predicated region fallthrough
CT: control target
= control target key end

     0   :  { %16 = vsyncpa [#allocation3], 0  ;;  %s2931_s0 = inlined_call_operand.vmem [shape: f32[2,64,256], index: 0, kind: input, shape index: {}]   ;;  %s2932_s1 = inlined_call_operand.vmem [shape: f32[256,16], index: 1, kind: input, shape index: {}]   ;;  %s2933_s2 = inlined_call_operand.vmem [shape: f32[256,16], index: 2, kind: input, shape index: {}]   ;;  %s2934_s3 = inlined_call_operand.vmem [shape: f32[16,256], index: 3, kind: input, shape index: {}]   ;;  %s2935_s4 = inlined_call_operand.vmem [shape: f32[16,256], index: 4, kind: input, shape index: {}]   ;;  %s2936_s5 = inlined_call_operand.vmem [shape: f32[8,64], index: 5, kind: input, shape index: {}]   ;;  %s2937_s6 = inlined_call_operand.vmem [shape: f32[8,1], index: 6, kind: input, shape index: {}]   ;;  %s2938_s7 = inlined_call_operand.vmem [shape: f32[64,8], index: 7, kind: input, shape index: {}]   ;;  %s2939_s8 = inlined_call_operand.vmem [shape: f32[64,1], index: 8, kind: input, shape index: {}]   ;;  %s2940_s9 = inlined_call_operand.vmem [shape: f32[64,8], index: 9, kind: input, shape index: {}]   ;;  %s2941_s10 = inlined_call_operand.vmem [shape: f32[64,1], index: 10, kind: input, shape index: {}]   ;;  %s2942_s11 = inlined_call_operand.hbm [shape: f32[2,64,256], index: 11, kind: output, shape index: {}]  }
   0x1   :  { %18 = vsyncpa [#allocation3 + $0x1], 0  ;;  %s2326_s17 = smov 0   ;;  %s2328_s18 = smov 0  }
   0x2   :  { %s2330_s19 = smov 0   ;;  %s2332_s20 = smov 0  }
   0x3 LB: > { %2944 = sst [smem:[#allocation5_spill]] %s2253_s19  ;;  %s2347_s21 = sadd.s32 4294967295, %s2257_s20   ;;  %s2257_s20 = sphi %s2332_s20, %s2952_s20   ;;  %s2253_s19 = sphi %s2330_s19, %s2949_s19   ;;  %s2249_s18 = sphi %s2328_s18, %s2951_s18   ;;  %s2245_s17 = sphi %s2326_s17, %s2950_s17  }
   0x4   : > { %s1710_s22 = sadd.s32 4294967294, %s2257_s20   ;;  %s2351_s23 = sadd.s32 1, %s2257_s20  }
   0x5   : > { %s267_s24 = sadd.s32 1, %s2253_s19  ;;  %s264_s25 = ssub.s32 %s2257_s20, %s2351_s23 }
   0x6   : > { %p277_p0 = scmp.ne.s32.totalorder %s2253_s19, %s2249_s18  ;;  %p265_p1 = scmp.eq.s32.totalorder %s264_s25, 0 }
   0x7   : > { %p278_p2 = scmp.eq.s32.totalorder %s2347_s21, 1  ;;  %p283_p3 = scmp.ne.s32.totalorder %s2249_s18, %s2245_s17 }
   0x8   : > { %p284_p4 = scmp.eq.s32.totalorder %s1710_s22, 1  ;;  %p1713_p7 = scmp.ge.s32.totalorder %s2257_s20, 1 }
   0x9   : > { %s2362_s26 = scalar_select %p265_p1, %s2253_s19, %s267_s24  }
   0xa   : > { %p2364_p5 = por %p278_p2, %p277_p0  ;;  %p2368_p6 = por %p284_p4, %p283_p3 }
   0xb   : > { %2945 = sst [smem:[#allocation6_spill]] %s2362_s26  ;;  %p340_p8 = scmp.lt.s32.totalorder %s2257_s20, 3 }
   0xd   : > { %p341_p9 = pnand %p1713_p7, %p340_p8 }
   0xe   : > { %v417_v0 = vld [vmem:[%s2932_s1 + $0x80] sm:$0xff] (!%p341_p9)  ;;  %v418_v1 = vld [vmem:[%s2932_s1 + $0x88] sm:$0xff] (!%p341_p9)  ;;  %v419_v11 = vld [vmem:[%s2932_s1 + $0x90] sm:$0xff] (!%p341_p9)  ;;  %p380_p10 = scmp.lt.s32.totalorder (!%p341_p9), %s2347_s21, 1  ;;  %vm2260_vm0 = vmmov (!%p341_p9), 0   ;;  %vm682_vm1 = vcmask (!%p341_p9), 523264  }
   0xf   : > { %344 = sbr.rel (%p341_p9) target bundleno = 1028 (0x404), region = 64  ;;  %v554_v2 = vld [vmem:[%s2933_s2 + $0x80] sm:$0xff] (!%p341_p9)  ;;  %v1988_v3 = vpack.c.bf16 (!%p341_p9), %v418_v1, %v417_v0  ;;  %v555_v4 = vld [vmem:[%s2933_s2 + $0x88] sm:$0xff] (!%p341_p9)  ;;  %v420_v13 = vld [vmem:[%s2932_s1 + $0x98] sm:$0xff] (!%p341_p9)  ;;  %vm892_vm2 = vcmask (!%p341_p9), 64512   ;;  %vm1307_vm3 = vcmask (!%p341_p9), 130048  }
  0x10   : > { %v401_v5 = vld [vmem:[%s2932_s1] sm:$0xff] (!%p341_p9)  ;;  %v402_v6 = vld [vmem:[%s2932_s1 + $0x8] sm:$0xff] (!%p341_p9)  ;;  %v2020_v7 = vpack.c.bf16 (!%p341_p9), %v555_v4, %v554_v2  ;;  %v556_v14 = vld [vmem:[%s2933_s2 + $0x90] sm:$0xff] (!%p341_p9)  ;;  %v1992_v16 = vpack.c.bf16 (!%p341_p9), %v420_v13, %v419_v11  ;;  %s1773_s29 = sshll.u32 (!%p341_p9), %s2347_s21, 11  ;;  %s2263_s22 = smov (!%p341_p9), [#allocation2]  }
  0x11   : > { %v1990_v8 = vpack.c.bf16 (!%p341_p9), %v402_v6, %v401_v5  ;;  %v538_v9 = vld [vmem:[%s2933_s2] sm:$0xff] (!%p341_p9)  ;;  %v539_v10 = vld [vmem:[%s2933_s2 + $0x8] sm:$0xff] (!%p341_p9)  ;;  %1989 = vmatprep.subr.bf16.mxu0 (!%p341_p9), %v1988_v3  ;;  %v557_v15 = vld [vmem:[%s2933_s2 + $0x98] sm:$0xff] (!%p341_p9)  ;;  %s2881_s16 = scalar_lea.hbm (!%p341_p9), %s2942_s11, %s1773_s29  ;;  %s2199_s24 = sshll.u32 (!%p341_p9), %s2263_s22, 4  ;;  %s2200_s24 = int_to_ptr.vmem [resolvable:$false] %s2199_s24 }
  0x12   : > { %v2022_v12 = vpack.c.bf16 (!%p341_p9), %v539_v10, %v538_v9  ;;  %2021 = vmatprep.subr.bf16.mxu1 (!%p341_p9), %v2020_v7  ;;  %v2024_v17 = vpack.c.bf16 (!%p341_p9), %v557_v15, %v556_v14  ;;  %v403_v18 = vld [vmem:[%s2932_s1 + $0x10] sm:$0xff] (!%p341_p9)  ;;  %v404_v19 = vld [vmem:[%s2932_s1 + $0x18] sm:$0xff] (!%p341_p9)  ;;  %v421_v23 = vld [vmem:[%s2932_s1 + $0xa0] sm:$0xff] (!%p341_p9)  ;;  %s2201_s26 = scalar_lea.vmem (!%p341_p9), %s2200_s24, 4096 }
  0x13   : > { %1991 = vmatpush3.bf16.msra.mxu0 (!%p341_p9), %v1990_v8  ;;  %v540_v20 = vld [vmem:[%s2933_s2 + $0x10] sm:$0xff] (!%p341_p9)  ;;  %v1994_v21 = vpack.c.bf16 (!%p341_p9), %v404_v19, %v403_v18  ;;  %v541_v22 = vld [vmem:[%s2933_s2 + $0x18] sm:$0xff] (!%p341_p9)  ;;  %v422_v24 = vld [vmem:[%s2932_s1 + $0xa8] sm:$0xff] (!%p341_p9) }
  0x14   : > { %2023 = vmatpush3.bf16.msra.mxu1 (!%p341_p9), %v2022_v12  ;;  %1993 = vmatprep.subr.bf16.mxu0 (!%p341_p9), %v1992_v16  ;;  %v2026_v25 = vpack.c.bf16 (!%p341_p9), %v541_v22, %v540_v20  ;;  %v1996_v26 = vpack.c.bf16 (!%p341_p9), %v422_v24, %v421_v23  ;;  %v558_v27 = vld [vmem:[%s2933_s2 + $0xa0] sm:$0xff] (!%p341_p9)  ;;  %v559_v28 = vld [vmem:[%s2933_s2 + $0xa8] sm:$0xff] (!%p341_p9)  ;;  %v423_v35 = vld [vmem:[%s2932_s1 + $0xb0] sm:$0xff] (!%p341_p9) }
  0x15   : > { %2025 = vmatprep.subr.bf16.mxu1 (!%p341_p9), %v2024_v17  ;;  %v405_v29 = vld [vmem:[%s2932_s1 + $0x20] sm:$0xff] (!%p341_p9)  ;;  %v2028_v30 = vpack.c.bf16 (!%p341_p9), %v559_v28, %v558_v27  ;;  %v406_v31 = vld [vmem:[%s2932_s1 + $0x28] sm:$0xff] (!%p341_p9)  ;;  %v424_v36 = vld [vmem:[%s2932_s1 + $0xb8] sm:$0xff] (!%p341_p9) }
  0x16   : > { %v542_v32 = vld [vmem:[%s2933_s2 + $0x20] sm:$0xff]  ;;  %v543_v33 = vld [vmem:[%s2933_s2 + $0x28] sm:$0xff]  ;;  %v1998_v34 = vpack.c.bf16 %v406_v31, %v405_v29  ;;  %v560_v37 = vld [vmem:[%s2933_s2 + $0xb0] sm:$0xff]  ;;  %v2000_v39 = vpack.c.bf16 %v424_v36, %v423_v35  ;;  %s2486_s15 = scalar_select %p380_p10, %s2347_s21, 1 }
  0x17   : > { %1995 = vmatpush3.bf16.msra.mxu0 %v1994_v21  ;;  %v2030_v38 = vpack.c.bf16 %v543_v33, %v542_v32  ;;  %v561_v40 = vld [vmem:[%s2933_s2 + $0xb8] sm:$0xff]  ;;  %v407_v41 = vld [vmem:[%s2932_s1 + $0x30] sm:$0xff]  ;;  %v425_v46 = vld [vmem:[%s2932_s1 + $0xc0] sm:$0xff] }
  0x18   : > { %2027 = vmatpush3.bf16.msra.mxu1 %v2026_v25  ;;  %1997 = vmatprep.subr.bf16.mxu0 %v1996_v26  ;;  %v408_v42 = vld [vmem:[%s2932_s1 + $0x38] sm:$0xff]  ;;  %v2032_v43 = vpack.c.bf16 %v561_v40, %v560_v37  ;;  %v544_v44 = vld [vmem:[%s2933_s2 + $0x30] sm:$0xff]  ;;  %v426_v47 = vld [vmem:[%s2932_s1 + $0xc8] sm:$0xff]  ;;  %s1772_s25 = sshll.u32 %s2486_s15, 7 }
  0x19   : > { %2029 = vmatprep.subr.bf16.mxu1 %v2028_v30  ;;  %v545_v45 = vld [vmem:[%s2933_s2 + $0x38] sm:$0xff]  ;;  %v562_v48 = vld [vmem:[%s2933_s2 + $0xc0] sm:$0xff]  ;;  %v563_v49 = vld [vmem:[%s2933_s2 + $0xc8] sm:$0xff]  ;;  %v2002_v50 = vpack.c.bf16 %v408_v42, %v407_v41  ;;  %v2004_v52 = vpack.c.bf16 %v426_v47, %v425_v46  ;;  %s2534_s13 = scalar_lea.vmem %s2931_s0, %s1772_s25  ;;  %s377_s25 = sand.u32 1, %s2249_s18  }
  0x1a   : > { %v2034_v51 = vpack.c.bf16 %v545_v45, %v544_v44  ;;  %v409_v53 = vld [vmem:[%s2932_s1 + $0x40] sm:$0xff]  ;;  %v410_v54 = vld [vmem:[%s2932_s1 + $0x48] sm:$0xff]  ;;  %v2036_v56 = vpack.c.bf16 %v563_v49, %v562_v48  ;;  %v427_v58 = vld [vmem:[%s2932_s1 + $0xd0] sm:$0xff]  ;;  %v2259_v48 = vmov 0.0|0.0   ;;  %v2261_v49 = vmov 0.0   ;;  %s2890_s21 = scalar_lea.sflag [#allocation3], %s377_s25 }
  0x1b   : > { %1999 = vmatpush3.bf16.msra.mxu0 %v1998_v34  ;;  %v546_v55 = vld [vmem:[%s2933_s2 + $0x40] sm:$0xff]  ;;  %v547_v57 = vld [vmem:[%s2933_s2 + $0x48] sm:$0xff]  ;;  %v428_v59 = vld [vmem:[%s2932_s1 + $0xd8] sm:$0xff]  ;;  %v2006_v62 = vpack.c.bf16 %v410_v54, %v409_v53 }
  0x1c   : > { %2031 = vmatpush3.bf16.msra.mxu1 %v2030_v38  ;;  %2001 = vmatprep.subr.bf16.mxu0 %v2000_v39  ;;  %v564_v60 = vld [vmem:[%s2933_s2 + $0xd0] sm:$0xff]  ;;  %v565_v61 = vld [vmem:[%s2933_s2 + $0xd8] sm:$0xff]  ;;  %v2038_v63 = vpack.c.bf16 %v547_v57, %v546_v55  ;;  %v2008_v0 = vpack.c.bf16 %v428_v59, %v427_v58  ;;  %v429_v6 = vld [vmem:[%s2932_s1 + $0xe0] sm:$0xff] }
  0x1d   : > { %2033 = vmatprep.subr.bf16.mxu1 %v2032_v43  ;;  %v411_v1 = vld [vmem:[%s2932_s1 + $0x50] sm:$0xff]  ;;  %v412_v2 = vld [vmem:[%s2932_s1 + $0x58] sm:$0xff]  ;;  %v2040_v4 = vpack.c.bf16 %v565_v61, %v564_v60  ;;  %v430_v7 = vld [vmem:[%s2932_s1 + $0xe8] sm:$0xff] }
  0x1e   : > { %v548_v3 = vld [vmem:[%s2933_s2 + $0x50] sm:$0xff]  ;;  %v549_v5 = vld [vmem:[%s2933_s2 + $0x58] sm:$0xff]  ;;  %v566_v8 = vld [vmem:[%s2933_s2 + $0xe0] sm:$0xff]  ;;  %v2010_v10 = vpack.c.bf16 %v412_v2, %v411_v1  ;;  %v2012_v13 = vpack.c.bf16 %v430_v7, %v429_v6 }
  0x1f   : > { %2003 = vmatpush3.bf16.msra.mxu0 %v2002_v50  ;;  %v567_v9 = vld [vmem:[%s2933_s2 + $0xe8] sm:$0xff]  ;;  %v413_v11 = vld [vmem:[%s2932_s1 + $0x60] sm:$0xff]  ;;  %v2042_v12 = vpack.c.bf16 %v549_v5, %v548_v3  ;;  %v431_v19 = vld [vmem:[%s2932_s1 + $0xf0] sm:$0xff] }
  0x20   : > { %2035 = vmatpush3.bf16.msra.mxu1 %v2034_v51  ;;  %2005 = vmatprep.subr.bf16.mxu0 %v2004_v52  ;;  %v414_v14 = vld [vmem:[%s2932_s1 + $0x68] sm:$0xff]  ;;  %v550_v15 = vld [vmem:[%s2933_s2 + $0x60] sm:$0xff]  ;;  %v2044_v17 = vpack.c.bf16 %v567_v9, %v566_v8  ;;  %v432_v20 = vld [vmem:[%s2932_s1 + $0xf8] sm:$0xff]  ;;  %v2262_v51 = vmov 0  }
  0x21   : > { %2037 = vmatprep.subr.bf16.mxu1 %v2036_v56  ;;  %v2552_v16 = vld [vmem:[%s2534_s13 + $0x8] sm:$0xff]  ;;  %v568_v21 = vld [vmem:[%s2933_s2 + $0xf0] sm:$0xff]  ;;  %v569_v22 = vld [vmem:[%s2933_s2 + $0xf8] sm:$0xff]  ;;  %v2014_v23 = vpack.c.bf16 %v414_v14, %v413_v11  ;;  %v2016_v25 = vpack.c.bf16 %v432_v20, %v431_v19  ;;  %2129 = vset.pattern.permute.xlu0 %v2262_v51 }
  0x22   : > { %v551_v18 = vld [vmem:[%s2933_s2 + $0x68] sm:$0xff]  ;;  %497 = vmatprep.mubr.f32.mxu0 %v2552_v16  ;;  %634 = vmatprep.mubr.f32.mxu1 %v2552_v16  ;;  %v415_v26 = vld [vmem:[%s2932_s1 + $0x70] sm:$0xff]  ;;  %v416_v27 = vld [vmem:[%s2932_s1 + $0x78] sm:$0xff]  ;;  %v2048_v28 = vpack.c.bf16 %v569_v22, %v568_v21 }
  0x23   : > { %2007 = vmatpush3.bf16.msra.mxu0 %v2006_v62  ;;  %v2046_v24 = vpack.c.bf16 %v551_v18, %v550_v15  ;;  %v552_v29 = vld [vmem:[%s2933_s2 + $0x70] sm:$0xff]  ;;  %v553_v30 = vld [vmem:[%s2933_s2 + $0x78] sm:$0xff]  ;;  %v2018_v31 = vpack.c.bf16 %v416_v27, %v415_v26  ;;  %v2584_v33 = vld [vmem:[%s2534_s13] sm:$0xff]  ;;  %2130 = vset.pattern.permute.xlu1 %v2262_v51 }
  0x24   : > { %2039 = vmatpush3.bf16.msra.mxu1 %v2038_v63  ;;  %2009 = vmatprep.subr.bf16.mxu0 %v2008_v0  ;;  %v2050_v32 = vpack.c.bf16 %v553_v30, %v552_v29  ;;  %v2587_v34 = vld [vmem:[%s2534_s13 + $0x18] sm:$0xff]  ;;  %v2593_v35 = vld [vmem:[%s2534_s13 + $0x10] sm:$0xff]  ;;  %v2597_v36 = vld [vmem:[%s2534_s13 + $0x28] sm:$0xff] }
  0x25   : > { %2041 = vmatprep.subr.bf16.mxu1 %v2040_v4  ;;  %v2603_v37 = vld [vmem:[%s2534_s13 + $0x20] sm:$0xff]  ;;  %v2607_v38 = vld [vmem:[%s2534_s13 + $0x38] sm:$0xff]  ;;  %v2613_v39 = vld [vmem:[%s2534_s13 + $0x30] sm:$0xff] }
  0x26   : > { %v2617_v40 = vld [vmem:[%s2534_s13 + $0x48] sm:$0xff]  ;;  %v2623_v41 = vld [vmem:[%s2534_s13 + $0x40] sm:$0xff]  ;;  %v2627_v42 = vld [vmem:[%s2534_s13 + $0x58] sm:$0xff] }
  0x27   : > { %2011 = vmatpush3.bf16.msra.mxu0 %v2010_v10  ;;  %v2633_v43 = vld [vmem:[%s2534_s13 + $0x50] sm:$0xff]  ;;  %v2637_v44 = vld [vmem:[%s2534_s13 + $0x68] sm:$0xff]  ;;  %v2643_v45 = vld [vmem:[%s2534_s13 + $0x60] sm:$0xff] }
  0x28   : > { %2043 = vmatpush3.bf16.msra.mxu1 %v2042_v12  ;;  %2013 = vmatprep.subr.bf16.mxu0 %v2012_v13  ;;  %v2647_v46 = vld [vmem:[%s2534_s13 + $0x78] sm:$0xff]  ;;  %v2653_v47 = vld [vmem:[%s2534_s13 + $0x70] sm:$0xff]  ;;  %v676_v50 = vld [vmem:[%s2937_s6] sm:$0xff]  ;;  %s1714_s13 = sshll.u32 %s377_s25, 7 }
  0x29   : > { %2045 = vmatprep.subr.bf16.mxu1 %v2044_v17  ;;  %679 = vperm.xlu0 %2129, %v676_v50   ;;  %v844_v52 = vld [vmem:[%s2939_s8] sm:$0xff]  ;;  %v1079_v53 = vld [vmem:[%s2941_s10 + $0x8] sm:$0xff]  ;;  %v1080_v54 = vld [vmem:[%s2941_s10 + $0x10] sm:$0xff]  ;;  %s2847_s19 = scalar_lea.vmem [#allocation2], %s1714_s13 }
  0x2a   : > { %v1081_v55 = vld [vmem:[%s2941_s10 + $0x18] sm:$0xff]  ;;  %v1082_v56 = vld [vmem:[%s2941_s10 + $0x20] sm:$0xff]  ;;  %v1083_v57 = vld [vmem:[%s2941_s10 + $0x28] sm:$0xff]  ;;  %s1648_s30 = sshll.u32 %s2847_s19, 4  ;;  %s2883_s30 = int_to_ptr.vmem [resolvable:$true] %s1648_s30 }
  0x2b   : > { %2015 = vmatpush3.bf16.msra.mxu0 %v2014_v23  ;;  %v1084_v58 = vld [vmem:[%s2941_s10 + $0x30] sm:$0xff]  ;;  %v1085_v59 = vld [vmem:[%s2941_s10 + $0x38] sm:$0xff]  ;;  %s2195_s15 = scalar_lea.vmem %s2883_s30, 2048  ;;  %p2202_p0 = scmp.lt.s32.totalorder %s2883_s30, %s2200_s24 }
  0x2c   : > { %2047 = vmatpush3.bf16.msra.mxu1 %v2046_v24  ;;  %2017 = vmatprep.subr.bf16.mxu0 %v2016_v25  ;;  %p2196_p11 = scmp.ne.s32.totalorder %s2883_s30, %s2195_s15  ;;  %p2203_p1 = scmp.lt.s32.totalorder %s2201_s26, %s2195_s15 }
  0x2d   : > { %2049 = vmatprep.subr.bf16.mxu1 %v2048_v28  ;;  %854 = vperm.xlu0 %2129, %v844_v52  }
  0x2e   : > { %p2197_p12 = pnand %p2196_p11, %p2364_p5  ;;  %p2204_p2 = por %p2203_p1, %p2202_p0 }
  0x2f   : > { %2019 = vmatpush3.bf16.msra.mxu0 %v2018_v31 }
  0x30   : > { %2051 = vmatpush3.bf16.msra.mxu1 %v2050_v32  ;;  %2052 = vmatprep.subr.bf16.mxu0 %v2259_v48  ;;  %p2198_p13 = pneg %p2197_p12 }
  0x31   : > { %2064 = vmatprep.subr.bf16.mxu1 %v2259_v48  ;;  %1093 = vperm.xlu0 %2129, %v1079_v53  }
  0x32   : > { %498 = vmatmul.mubr.f32.vlgmr.msra.gmra.mrb[0].mxu0 %v2584_v33  ;;  %p2205_p3 = pnand %p2204_p2, %p2198_p13 }
  0x33   : > { %635 = vmatmul.mubr.f32.vlgmr.msra.gmra.mrb[0].mxu1 %v2584_v33  ;;  %502 = vmatprep.mubr.f32.mxu0 %v2587_v34 }
  0x34   : > { %639 = vmatprep.mubr.f32.mxu1 %v2587_v34 }
  0x35   : > { %1098 = vperm.xlu0 %2129, %v1080_v54  }
  0x36   : > { %503 = vmatmul.mubr.f32.gmra.mrb[2].mxu0 %v2593_v35 }
  0x37   : > { %640 = vmatmul.mubr.f32.gmra.mrb[2].mxu1 %v2593_v35  ;;  %507 = vmatprep.mubr.f32.mxu0 %v2597_v36 }
  0x38   : > { %644 = vmatprep.mubr.f32.mxu1 %v2597_v36 }
  0x39   : > { %1103 = vperm.xlu0 %2129, %v1081_v55  }
  0x3a   : > { %508 = vmatmul.mubr.f32.gmra.mrb[4].mxu0 %v2603_v37 }
  0x3b   : > { %645 = vmatmul.mubr.f32.gmra.mrb[4].mxu1 %v2603_v37  ;;  %512 = vmatprep.mubr.f32.mxu0 %v2607_v38 }
  0x3c   : > { %649 = vmatprep.mubr.f32.mxu1 %v2607_v38 }
  0x3d   : > { %1108 = vperm.xlu0 %2129, %v1082_v56  }
  0x3e   : > { %513 = vmatmul.mubr.f32.gmra.mrb[6].mxu0 %v2613_v39 }
  0x3f   : > { %650 = vmatmul.mubr.f32.gmra.mrb[6].mxu1 %v2613_v39  ;;  %517 = vmatprep.mubr.f32.mxu0 %v2617_v40 }
  0x40   : > { %654 = vmatprep.mubr.f32.mxu1 %v2617_v40 }
  0x41   : > { %1113 = vperm.xlu0 %2129, %v1083_v57  }
  0x42   : > { %518 = vmatmul.mubr.f32.gmra.mrb[8].mxu0 %v2623_v41 }
  0x43   : > { %655 = vmatmul.mubr.f32.gmra.mrb[8].mxu1 %v2623_v41  ;;  %522 = vmatprep.mubr.f32.mxu0 %v2627_v42 }
  0x44   : > { %659 = vmatprep.mubr.f32.mxu1 %v2627_v42 }
  0x45   : > { %1118 = vperm.xlu0 %2129, %v1084_v58  }
  0x46   : > { %523 = vmatmul.mubr.f32.gmra.mrb[10].mxu0 %v2633_v43 }
  0x47   : > { %660 = vmatmul.mubr.f32.gmra.mrb[10].mxu1 %v2633_v43  ;;  %527 = vmatprep.mubr.f32.mxu0 %v2637_v44 }
  0x48   : > { %664 = vmatprep.mubr.f32.mxu1 %v2637_v44 }
  0x49   : > { %1123 = vperm.xlu0 %2129, %v1085_v59  }
  0x4a   : > { %528 = vmatmul.mubr.f32.gmra.mrb[12].mxu0 %v2643_v45 }
  0x4b   : > { %665 = vmatmul.mubr.f32.gmra.mrb[12].mxu1 %v2643_v45  ;;  %532 = vmatprep.mubr.f32.mxu0 %v2647_v46 }
  0x4c   : > { %669 = vmatprep.mubr.f32.mxu1 %v2647_v46 }
  0x4e   : > { %533 = vmatmul.mubr.f32.gmra.mrb[14].mxu0 %v2653_v47 }
  0x4f   : > { %670 = vmatmul.mubr.f32.gmra.mrb[14].mxu1 %v2653_v47  ;;  %1938 = vmatprep.mubr.msk.f32.mxu0 %vm2260_vm0, %v2261_v49 }
  0x50   : > { %1957 = vmatprep.mubr.msk.f32.mxu1 %vm2260_vm0, %v2261_v49 }
 0x105   : > { %v1806_v60 = vpop.f32.mrb[0].mxu0 }
 0x106   : > { %v1862_v61 = vpop.f32.mrb[0].mxu1  ;;  %v1807_v62 = vpop.f32.mrb[1].mxu0 }
 0x107   : > { %v1808_v63 = vadd.f32 %v1807_v62, %v1806_v60  ;;  %v1863_v0 = vpop.f32.mrb[1].mxu1 }
 0x108   : > { %v1864_v1 = vadd.f32 %v1863_v0, %v1862_v61 }
 0x109   : > { %v1809_v2 = vpop.f32.mrb[2].mxu0 }
 0x10a   : > { %v1865_v3 = vpop.f32.mrb[2].mxu1  ;;  %v1810_v4 = vpop.f32.mrb[3].mxu0 }
 0x10b   : > { %v1811_v5 = vadd.f32 %v1810_v4, %v1809_v2  ;;  %v1866_v6 = vpop.f32.mrb[3].mxu1 }
 0x10c   : > { %v1867_v7 = vadd.f32 %v1866_v6, %v1865_v3  ;;  %v675_v6 = vld [vmem:[%s2936_s5] sm:$0xff] }
 0x10d   : > { %v2053_v8 = vpack.c.bf16 %v1811_v5, %v1808_v63  ;;  %v1812_v9 = vpop.f32.mrb[4].mxu0 }
 0x10e   : > { %v2065_v10 = vpack.c.bf16 %v1867_v7, %v1864_v1  ;;  %v1868_v11 = vpop.f32.mrb[4].mxu1  ;;  %v1813_v12 = vpop.f32.mrb[5].mxu0  ;;  %v1070_v7 = vld [vmem:[%s2940_s9] sm:$0xff] }
 0x10f   : > { %v1814_v13 = vadd.f32 %v1813_v12, %v1812_v9  ;;  %v1869_v14 = vpop.f32.mrb[5].mxu1  ;;  %2054 = vmatpush3.bf16.msra.mxu0 %v2053_v8  ;;  %v1078_v8 = vld [vmem:[%s2941_s10] sm:$0xff]  ;;  %v845_v9 = vld [vmem:[%s2939_s8 + $0x8] sm:$0xff] }
 0x110   : > { %v1870_v15 = vadd.f32 %v1869_v14, %v1868_v11  ;;  %2066 = vmatpush3.bf16.msra.mxu1 %v2065_v10  ;;  %2055 = vmatprep.subr.bf16.mxu0 %v2259_v48  ;;  %v846_v10 = vld [vmem:[%s2939_s8 + $0x10] sm:$0xff]  ;;  %v847_v11 = vld [vmem:[%s2939_s8 + $0x18] sm:$0xff]  ;;  %v848_v12 = vld [vmem:[%s2939_s8 + $0x20] sm:$0xff] }
 0x111   : > { %v1815_v17 = vpop.f32.mrb[6].mxu0  ;;  %2067 = vmatprep.subr.bf16.mxu1 %v2259_v48  ;;  %1088 = vperm.xlu1 %2130, %v1078_v8   ;;  %v850_v14 = vld [vmem:[%s2939_s8 + $0x30] sm:$0xff] }
 0x112   : > { %v1871_v18 = vpop.f32.mrb[6].mxu1  ;;  %v1816_v19 = vpop.f32.mrb[7].mxu0 }
 0x113   : > { %v1817_v20 = vadd.f32 %v1816_v19, %v1815_v17  ;;  %v1872_v21 = vpop.f32.mrb[7].mxu1  ;;  %v680_v17 = vpop.permute.xlu0 %679 }
 0x114   : > { %v1873_v22 = vadd.f32 %v1872_v21, %v1871_v18 }
 0x115   : > { %v2056_v23 = vpack.c.bf16 %v1817_v20, %v1814_v13  ;;  %v1818_v24 = vpop.f32.mrb[8].mxu0  ;;  %859 = vperm.xlu1 %2130, %v845_v9   ;;  %v849_v13 = vld [vmem:[%s2939_s8 + $0x28] sm:$0xff]  ;;  %v1445_v9 = vld [vmem:[%s2935_s4] sm:$0xff] }
 0x116   : > { %v2068_v25 = vpack.c.bf16 %v1873_v22, %v1870_v15  ;;  %v1874_v26 = vpop.f32.mrb[8].mxu1  ;;  %v1819_v27 = vpop.f32.mrb[9].mxu0  ;;  %v851_v15 = vld [vmem:[%s2939_s8 + $0x38] sm:$0xff] }
 0x117   : > { %v1820_v28 = vadd.f32 %v1819_v27, %v1818_v24  ;;  %v1875_v29 = vpop.f32.mrb[9].mxu1  ;;  %2057 = vmatpush3.bf16.msra.mxu0 %v2056_v23 }
 0x118   : > { %v1876_v30 = vadd.f32 %v1875_v29, %v1874_v26  ;;  %2069 = vmatpush3.bf16.msra.mxu1 %v2068_v25  ;;  %2058 = vmatprep.subr.bf16.mxu0 %v2259_v48 }
 0x119   : > { %v1821_v31 = vpop.f32.mrb[10].mxu0  ;;  %2070 = vmatprep.subr.bf16.mxu1 %v2259_v48  ;;  %864 = vperm.xlu1 %2130, %v846_v10   ;;  %v1447_v10 = vld [vmem:[%s2935_s4 + $0x10] sm:$0xff] }
 0x11a   : > { %v1877_v32 = vpop.f32.mrb[10].mxu1  ;;  %v1822_v50 = vpop.f32.mrb[11].mxu0 }
 0x11b   : > { %v1823_v51 = vadd.f32 %v1822_v50, %v1821_v31  ;;  %v1878_v52 = vpop.f32.mrb[11].mxu1 }
 0x11c   : > { %v1879_v53 = vadd.f32 %v1878_v52, %v1877_v32  ;;  %v1071_v52 = vld [vmem:[%s2940_s9 + $0x8] sm:$0xff] }
 0x11d   : > { %v2059_v54 = vpack.c.bf16 %v1823_v51, %v1820_v28  ;;  %v1824_v55 = vpop.f32.mrb[12].mxu0  ;;  %869 = vperm.xlu1 %2130, %v847_v11   ;;  %v837_v51 = vld [vmem:[%s2938_s7 + $0x8] sm:$0xff]  ;;  %v2082_v11 = vpack.c.bf16 %v1447_v10, %v1445_v9 }
 0x11e   : > { %v2071_v56 = vpack.c.bf16 %v1879_v53, %v1876_v30  ;;  %v1880_v57 = vpop.f32.mrb[12].mxu1  ;;  %v1825_v58 = vpop.f32.mrb[13].mxu0  ;;  %v838_v53 = vld [vmem:[%s2938_s7 + $0x10] sm:$0xff] }
 0x11f   : > { %v1826_v59 = vadd.f32 %v1825_v58, %v1824_v55  ;;  %v1881_v60 = vpop.f32.mrb[13].mxu1  ;;  %2060 = vmatpush3.bf16.msra.mxu0 %v2059_v54  ;;  %v1072_v54 = vld [vmem:[%s2940_s9 + $0x10] sm:$0xff]  ;;  %v839_v55 = vld [vmem:[%s2938_s7 + $0x18] sm:$0xff]  ;;  %v1074_v58 = vld [vmem:[%s2940_s9 + $0x20] sm:$0xff] }
 0x120   : > { %v1882_v61 = vadd.f32 %v1881_v60, %v1880_v57  ;;  %2072 = vmatpush3.bf16.msra.mxu1 %v2071_v56  ;;  %2061 = vmatprep.subr.bf16.mxu0 %v2259_v48  ;;  %v1073_v56 = vld [vmem:[%s2940_s9 + $0x18] sm:$0xff]  ;;  %v840_v57 = vld [vmem:[%s2938_s7 + $0x20] sm:$0xff]  ;;  %v1075_v60 = vld [vmem:[%s2940_s9 + $0x28] sm:$0xff] }
 0x121   : > { %v1827_v62 = vpop.f32.mrb[14].mxu0  ;;  %2073 = vmatprep.subr.bf16.mxu1 %v2259_v48  ;;  %v836_v48 = vld [vmem:[%s2938_s7] sm:$0xff]  ;;  %874 = vperm.xlu1 %2130, %v848_v12  }
 0x122   : > { %v1883_v63 = vpop.f32.mrb[14].mxu1  ;;  %v1828_v0 = vpop.f32.mrb[15].mxu0 }
 0x123   : > { %v1829_v1 = vadd.f32 %v1828_v0, %v1827_v62  ;;  %v1884_v2 = vpop.f32.mrb[15].mxu1  ;;  %v1076_v62 = vld [vmem:[%s2940_s9 + $0x30] sm:$0xff]  ;;  %v1077_v0 = vld [vmem:[%s2940_s9 + $0x38] sm:$0xff] }
 0x124   : > { %v1885_v3 = vadd.f32 %v1884_v2, %v1883_v63  ;;  %v843_v63 = vld [vmem:[%s2938_s7 + $0x38] sm:$0xff] }
 0x125   : > { %v2062_v4 = vpack.c.bf16 %v1829_v1, %v1826_v59  ;;  %879 = vperm.xlu1 %2130, %v849_v13   ;;  %v841_v59 = vld [vmem:[%s2938_s7 + $0x28] sm:$0xff]  ;;  %v1306_v2 = vld [vmem:[%s2934_s3 + $0x18] sm:$0xff]  ;;  %v855_v13 = vpop.permute.xlu0 %854 }
 0x126   : > { %v2074_v5 = vpack.c.bf16 %v1885_v3, %v1882_v61  ;;  %v842_v61 = vld [vmem:[%s2938_s7 + $0x30] sm:$0xff]  ;;  %v1304_v1 = vld [vmem:[%s2934_s3 + $0x8] sm:$0xff] }
 0x127   : > { %2063 = vmatpush3.bf16.msra.mxu0 %v2062_v4  ;;  %v1446_v3 = vld [vmem:[%s2935_s4 + $0x8] sm:$0xff]  ;;  %v2076_v4 = vpack.c.bf16 %v1306_v2, %v1304_v1 }
 0x128   : > { %2075 = vmatpush3.bf16.msra.mxu1 %v2074_v5  ;;  %v1448_v5 = vld [vmem:[%s2935_s4 + $0x18] sm:$0xff] }
 0x129   : > { %884 = vperm.xlu1 %2130, %v850_v14  }
 0x12a   : > { %1939 = vmatmul.mubr.msk.f32.vlgmr.msra.gmra.mrb[16].mxu0 %vm682_vm1, %v675_v6 }
 0x12b   : > { %1958 = vmatmul.mubr.msk.f32.vlgmr.msra.gmra.mrb[16].mxu1 %vm682_vm1, %v675_v6  ;;  %1962 = vmatprep.mubr.msk.f32.mxu0 %vm892_vm2, %v836_v48  ;;  %v1303_v6 = vld [vmem:[%s2934_s3] sm:$0xff]  ;;  %v1305_v48 = vld [vmem:[%s2934_s3 + $0x10] sm:$0xff] }
 0x12c   : > { %1976 = vmatprep.mubr.msk.f32.mxu1 %vm892_vm2, %v1070_v7  ;;  %v2080_v7 = vpack.c.bf16 %v1448_v5, %v1446_v3  ;;  %v2078_v8 = vpack.c.bf16 %v1305_v48, %v1303_v6 }
 0x12d   : > { %889 = vperm.xlu1 %2130, %v851_v15   ;;  %v1094_v15 = vpop.permute.xlu0 %1093 }
 0x190   : > { %v1089_v12 = vpop.permute.xlu1 %1088 }
 0x194   : > { %v860_v14 = vpop.permute.xlu1 %859 }
 0x1fd   : > { %v752_v18 = vpop.f32.mrb[16].mxu0 }
 0x1fe   : > { %v753_v19 = vadd.f32 %v752_v18, %v680_v17  ;;  %v822_v20 = vpop.f32.mrb[16].mxu1  ;;  %v1940_v21 = vpop.f32.mrb[17].mxu0 }
 0x1ff   : > { %v823_v22 = vadd.f32 %v822_v20, %v680_v17  ;;  %v1959_v23 = vpop.f32.mrb[17].mxu1  ;;  %v865_v17 = vpop.permute.xlu1 %864 }
 0x200   : > { %v826_v24 = vadd.f32 3.0, %v753_v19  ;;  %v1099_v18 = vpop.permute.xlu0 %1098 }
 0x201   : > { %v831_v25 = vadd.f32 3.0, %v823_v22 }
 0x202   : > { %v827_v26 = vmax.f32 %v826_v24, 0.0 }
 0x203   : > { %v832_v27 = vmax.f32 %v831_v25, 0.0 }
 0x204   : > { %v828_v28 = vmin.f32 %v827_v26, 6.0  ;;  %v1104_v20 = vpop.permute.xlu0 %1103 }
 0x205   : > { %v833_v29 = vmin.f32 %v832_v27, 6.0 }
 0x206   : > { %v829_v30 = vmul.f32 0.16666667, %v828_v28 }
 0x207   : > { %v834_v31 = vmul.f32 0.16666667, %v833_v29 }
 0x208   : > { %v830_v32 = vmul.f32 %v829_v30, %v753_v19  ;;  %v870_v19 = vpop.permute.xlu1 %869  ;;  %v1109_v29 = vpop.permute.xlu0 %1108 }
 0x209   : > { %v835_v50 = vmul.f32 %v834_v31, %v823_v22 }
 0x20a   : > { %1960 = vmatprep.subr.mxu0 %v830_v32 }
 0x20b   : > { %1974 = vmatprep.subr.mxu1 %v835_v50  ;;  %1961 = vmatpush3.msra.mxu0 %v830_v32 }
 0x20c   : > { %1975 = vmatpush3.msra.mxu1 %v835_v50  ;;  %1963 = vmatmul.mubr.msk.f32.vlgmr.msra.gmra.mrb[18].mxu0 %vm892_vm2, %v837_v51  ;;  %v875_v21 = vpop.permute.xlu1 %874 }
 0x20d   : > { %1977 = vmatmul.mubr.msk.f32.vlgmr.msra.gmra.mrb[18].mxu1 %vm892_vm2, %v1071_v52  ;;  %1965 = vmatprep.mubr.msk.f32.mxu0 %vm892_vm2, %v838_v53 }
 0x20e   : > { %1979 = vmatprep.mubr.msk.f32.mxu1 %vm892_vm2, %v1072_v54  ;;  %2077 = vmatprep.subr.bf16.mxu0 %v2076_v4  ;;  %v1114_v4 = vpop.permute.xlu0 %1113 }
 0x20f   : > { %2081 = vmatprep.subr.bf16.mxu1 %v2080_v7  ;;  %2079 = vmatpush1.bf16.msra.mxu0 %v2078_v8 }
 0x210   : > { %1966 = vmatmul.mubr.msk.f32.gmra.mrb[20].mxu0 %vm892_vm2, %v839_v55  ;;  %2083 = vmatpush1.bf16.msra.mxu1 %v2082_v11  ;;  %v880_v32 = vpop.permute.xlu1 %879 }
 0x211   : > { %1980 = vmatmul.mubr.msk.f32.gmra.mrb[20].mxu1 %vm892_vm2, %v1073_v56  ;;  %1968 = vmatprep.mubr.msk.f32.mxu0 %vm892_vm2, %v840_v57 }
 0x212   : > { %1982 = vmatprep.mubr.msk.f32.mxu1 %vm892_vm2, %v1074_v58 }
 0x214   : > { %1969 = vmatmul.mubr.msk.f32.gmra.mrb[22].mxu0 %vm892_vm2, %v841_v59  ;;  %v885_v48 = vpop.permute.xlu1 %884 }
 0x215   : > { %1983 = vmatmul.mubr.msk.f32.gmra.mrb[22].mxu1 %vm892_vm2, %v1075_v60  ;;  %1971 = vmatprep.mubr.msk.f32.mxu0 %vm892_vm2, %v842_v61 }
 0x216   : > { %1985 = vmatprep.mubr.msk.f32.mxu1 %vm892_vm2, %v1076_v62 }
 0x218   : > { %1972 = vmatmul.mubr.msk.f32.gmra.mrb[24].mxu0 %vm892_vm2, %v843_v63 }
 0x219   : > { %1986 = vmatmul.mubr.msk.f32.gmra.mrb[24].mxu1 %vm892_vm2, %v1077_v0  ;;  %1396 = vmatprep.mubr.f32.mxu0 %v2261_v49 }
 0x21a   : > { %1537 = vmatprep.mubr.f32.mxu1 %v2261_v49 }
 0x2df   : > { %v1964_v22 = vpop.f32.mrb[18].mxu0 }
 0x2e0   : > { %v989_v23 = vadd.f32 %v1964_v22, %v860_v14  ;;  %v1978_v24 = vpop.f32.mrb[18].mxu1  ;;  %v983_v25 = vpop.f32.mrb[19].mxu0 }
 0x2e1   : > { %v1222_v26 = vadd.f32 %v1978_v24, %v1094_v15  ;;  %v984_v27 = vadd.f32 %v983_v25, %v855_v13  ;;  %v1216_v28 = vpop.f32.mrb[19].mxu1  ;;  %v890_v22 = vpop.permute.xlu1 %889 }
 0x2e2   : > { %v1728_v30 = vmul.f32 -1.442695, %v989_v23  ;;  %v1217_v31 = vadd.f32 %v1216_v28, %v1089_v12 }
 0x2e3   : > { %v1744_v50 = vmul.f32 -1.442695, %v1222_v26  ;;  %v1727_v51 = vmul.f32 -1.442695, %v984_v27  ;;  %v1967_v52 = vpop.f32.mrb[20].mxu0 }
 0x2e4   : > { %2131 = vpow2.f32 %v1728_v30  ;;  %v1743_v53 = vmul.f32 -1.442695, %v1217_v31  ;;  %v1981_v54 = vpop.f32.mrb[20].mxu1  ;;  %v999_v55 = vadd.f32 %v1967_v52, %v870_v19  ;;  %v993_v56 = vpop.f32.mrb[21].mxu0 }
 0x2e5   : > { %2133 = vpow2.f32 %v1744_v50  ;;  %v1232_v57 = vadd.f32 %v1981_v54, %v1104_v20  ;;  %v1226_v58 = vpop.f32.mrb[21].mxu1  ;;  %v994_v59 = vadd.f32 %v993_v56, %v865_v17  ;;  %v1119_v19 = vpop.permute.xlu0 %1118 }
 0x2e6   : > { %2135 = vpow2.f32 %v1727_v51  ;;  %v1730_v60 = vmul.f32 -1.442695, %v999_v55  ;;  %v1227_v61 = vadd.f32 %v1226_v58, %v1099_v18 }
 0x2e7   : > { %2137 = vpow2.f32 %v1743_v53  ;;  %v1729_v62 = vmul.f32 -1.442695, %v994_v59  ;;  %v1970_v63 = vpop.f32.mrb[22].mxu0  ;;  %v1746_v0 = vmul.f32 -1.442695, %v1232_v57 }
 0x2e8   : > { %v1745_v1 = vmul.f32 -1.442695, %v1227_v61  ;;  %v1984_v2 = vpop.f32.mrb[22].mxu1  ;;  %v1003_v3 = vpop.f32.mrb[23].mxu0  ;;  %2139 = vpow2.f32 %v1730_v60  ;;  %v1009_v11 = vadd.f32 %v1970_v63, %v880_v32 }
 0x2e9   : > { %v1004_v5 = vadd.f32 %v1003_v3, %v875_v21  ;;  %v1236_v6 = vpop.f32.mrb[23].mxu1  ;;  %v1242_v15 = vadd.f32 %v1984_v2, %v1114_v4  ;;  %v1124_v50 = vpop.permute.xlu0 %1123 }
 0x2ea   : > { %2141 = vpow2.f32 %v1745_v1  ;;  %v1237_v7 = vadd.f32 %v1236_v6, %v1109_v29  ;;  %v1732_v24 = vmul.f32 -1.442695, %v1009_v11 }
 0x2eb   : > { %2143 = vpow2.f32 %v1729_v62  ;;  %v1973_v8 = vpop.f32.mrb[24].mxu0  ;;  %v1731_v12 = vmul.f32 -1.442695, %v1004_v5  ;;  %v1748_v27 = vmul.f32 -1.442695, %v1242_v15 }
 0x2ec   : > { %2145 = vpow2.f32 %v1746_v0  ;;  %v1987_v9 = vpop.f32.mrb[24].mxu1  ;;  %v1013_v10 = vpop.f32.mrb[25].mxu0  ;;  %v1747_v17 = vmul.f32 -1.442695, %v1237_v7  ;;  %v1019_v25 = vadd.f32 %v1973_v8, %v890_v22 }
 0x2ed   : > { %v1246_v13 = vpop.f32.mrb[25].mxu1  ;;  %2147 = vpow2.f32 %v1731_v12  ;;  %v1252_v54 = vadd.f32 %v1987_v9, %v1124_v50  ;;  %v1014_v56 = vadd.f32 %v1013_v10, %v885_v48 }
 0x2ee   : > { %v2132_v14 = vpop.eup %2131  ;;  %2149 = vpow2.f32 %v1747_v17  ;;  %v1734_v51 = vmul.f32 -1.442695, %v1019_v25  ;;  %v1247_v58 = vadd.f32 %v1246_v13, %v1119_v19 }
 0x2ef   : > { %v2134_v18 = vpop.eup %2133  ;;  %v1047_v29 = vadd.f32 1.0, %v2132_v14  ;;  %v1750_v60 = vmul.f32 -1.442695, %v1252_v54  ;;  %v1733_v62 = vmul.f32 -1.442695, %v1014_v56 }
 0x2f0   : > { %v2136_v20 = vpop.eup %2135  ;;  %v1280_v31 = vadd.f32 1.0, %v2134_v18  ;;  %v1749_v0 = vmul.f32 -1.442695, %v1247_v58 }
 0x2f1   : > { %v2138_v21 = vpop.eup %2137  ;;  %v1046_v23 = vadd.f32 1.0, %v2136_v20 }
 0x2f2   : > { %v1279_v26 = vadd.f32 1.0, %v2138_v21  ;;  %v2140_v28 = vpop.eup %2139 }
 0x2f3   : > { %2151 = vrcp.f32 %v1046_v23  ;;  %v1049_v53 = vadd.f32 1.0, %v2140_v28 }
 0x2f4   : > { %v2142_v30 = vpop.eup %2141  ;;  %2153 = vrcp.f32 %v1279_v26 }
 0x2f5   : > { %v2144_v32 = vpop.eup %2143  ;;  %2155 = vpow2.f32 %v1732_v24  ;;  %v1281_v57 = vadd.f32 1.0, %v2142_v30 }
 0x2f6   : > { %v2146_v52 = vpop.eup %2145  ;;  %2157 = vpow2.f32 %v1748_v27  ;;  %v1048_v55 = vadd.f32 1.0, %v2144_v32 }
 0x2f7   : > { %2159 = vrcp.f32 %v1047_v29  ;;  %v1282_v59 = vadd.f32 1.0, %v2146_v52  ;;  %v2148_v61 = vpop.eup %2147 }
 0x2f8   : > { %2161 = vrcp.f32 %v1280_v31  ;;  %v2150_v63 = vpop.eup %2149  ;;  %v1050_v4 = vadd.f32 1.0, %v2148_v61 }
 0x2f9   : > { %2163 = vpow2.f32 %v1734_v51  ;;  %v1283_v6 = vadd.f32 1.0, %v2150_v63 }
 0x2fa   : > { %2165 = vrcp.f32 %v1049_v53 }
 0x2fb   : > { %2167 = vrcp.f32 %v1048_v55 }
 0x2fc   : > { %2169 = vrcp.f32 %v1281_v57 }
 0x2fd   : > { %v2152_v1 = vpop.eup %2151  ;;  %2171 = vrcp.f32 %v1282_v59 }
 0x2fe   : > { %v2154_v2 = vpop.eup %2153  ;;  %2173 = vpow2.f32 %v1750_v60  ;;  %1751 = vmatmul.mubr.msk.f32.vlgmr.msra.gmra.mrb[26].mxu0 %vm1307_vm3, %v2152_v1 }
 0x2ff   : > { %v2156_v3 = vpop.eup %2155  ;;  %2175 = vpow2.f32 %v1733_v62  ;;  %1759 = vmatmul.mubr.msk.f32.vlgmr.msra.gmra.mrb[26].mxu1 %vm1307_vm3, %v2154_v2  ;;  %1402 = vmatprep.mubr.f32.mxu0 %v2261_v49 }
 0x300   : > { %v2158_v5 = vpop.eup %2157  ;;  %2177 = vpow2.f32 %v1749_v0  ;;  %1543 = vmatprep.mubr.f32.mxu1 %v2261_v49  ;;  %v1051_v9 = vadd.f32 1.0, %v2156_v3 }
 0x301   : > { %v2160_v48 = vpop.eup %2159  ;;  %2179 = vrcp.f32 %v1050_v4  ;;  %v1284_v11 = vadd.f32 1.0, %v2158_v5 }
 0x302   : > { %v2162_v7 = vpop.eup %2161  ;;  %1752 = vmatmul.mubr.msk.f32.gmra.mrb[28].mxu0 %vm1307_vm3, %v2160_v48  ;;  %2181 = vrcp.f32 %v1283_v6 }
 0x303   : > { %v2164_v8 = vpop.eup %2163  ;;  %1760 = vmatmul.mubr.msk.f32.gmra.mrb[28].mxu1 %vm1307_vm3, %v2162_v7  ;;  %1408 = vmatprep.mubr.f32.mxu0 %v2261_v49  ;;  %2183 = vrcp.f32 %v1051_v9 }
 0x304   : > { %v2166_v10 = vpop.eup %2165  ;;  %1549 = vmatprep.mubr.f32.mxu1 %v2261_v49  ;;  %2185 = vrcp.f32 %v1284_v11  ;;  %v1053_v22 = vadd.f32 1.0, %v2164_v8 }
 0x305   : > { %v2168_v12 = vpop.eup %2167 }
 0x306   : > { %v2170_v13 = vpop.eup %2169  ;;  %1753 = vmatmul.mubr.msk.f32.gmra.mrb[30].mxu0 %vm1307_vm3, %v2168_v12 }
 0x307   : > { %v2172_v14 = vpop.eup %2171  ;;  %1761 = vmatmul.mubr.msk.f32.gmra.mrb[30].mxu1 %vm1307_vm3, %v2170_v13  ;;  %1414 = vmatprep.mubr.f32.mxu0 %v2261_v49 }
 0x308   : > { %v2174_v15 = vpop.eup %2173  ;;  %1555 = vmatprep.mubr.f32.mxu1 %v2261_v49 }
 0x309   : > { %v2176_v17 = vpop.eup %2175  ;;  %v1286_v23 = vadd.f32 1.0, %v2174_v15 }
 0x30a   : > { %v2178_v18 = vpop.eup %2177  ;;  %v1052_v19 = vadd.f32 1.0, %v2176_v17  ;;  %1754 = vmatmul.mubr.msk.f32.gmra.mrb[32].mxu0 %vm1307_vm3, %v2166_v10 }
 0x30b   : > { %v1285_v20 = vadd.f32 1.0, %v2178_v18  ;;  %1762 = vmatmul.mubr.msk.f32.gmra.mrb[32].mxu1 %vm1307_vm3, %v2172_v14  ;;  %1420 = vmatprep.mubr.f32.mxu0 %v2261_v49  ;;  %v2180_v21 = vpop.eup %2179 }
 0x30c   : > { %2187 = vrcp.f32 %v1052_v19  ;;  %1561 = vmatprep.mubr.f32.mxu1 %v2261_v49  ;;  %v2182_v24 = vpop.eup %2181 }
 0x30d   : > { %2189 = vrcp.f32 %v1285_v20  ;;  %v2184_v25 = vpop.eup %2183 }
 0x30e   : > { %1755 = vmatmul.mubr.msk.f32.gmra.mrb[34].mxu0 %vm1307_vm3, %v2180_v21  ;;  %2191 = vrcp.f32 %v1053_v22  ;;  %v2186_v26 = vpop.eup %2185 }
 0x30f   : > { %1763 = vmatmul.mubr.msk.f32.gmra.mrb[34].mxu1 %vm1307_vm3, %v2182_v24  ;;  %1426 = vmatprep.mubr.f32.mxu0 %v2261_v49  ;;  %2193 = vrcp.f32 %v1286_v23 }
 0x310   : > { %1567 = vmatprep.mubr.f32.mxu1 %v2261_v49 }
 0x312   : > { %1756 = vmatmul.mubr.msk.f32.gmra.mrb[36].mxu0 %vm1307_vm3, %v2184_v25 }
 0x313   : > { %1764 = vmatmul.mubr.msk.f32.gmra.mrb[36].mxu1 %vm1307_vm3, %v2186_v26  ;;  %1432 = vmatprep.mubr.f32.mxu0 %v2261_v49 }
 0x314   : > { %1573 = vmatprep.mubr.f32.mxu1 %v2261_v49 }
 0x316   : > { %v2188_v27 = vpop.eup %2187 }
 0x317   : > { %v2190_v28 = vpop.eup %2189  ;;  %1757 = vmatmul.mubr.msk.f32.gmra.mrb[38].mxu0 %vm1307_vm3, %v2188_v27 }
 0x318   : > { %1765 = vmatmul.mubr.msk.f32.gmra.mrb[38].mxu1 %vm1307_vm3, %v2190_v28  ;;  %1438 = vmatprep.mubr.f32.mxu0 %v2261_v49  ;;  %v2192_v29 = vpop.eup %2191 }
 0x319   : > { %1579 = vmatprep.mubr.f32.mxu1 %v2261_v49  ;;  %v2194_v30 = vpop.eup %2193 }
 0x31b   : > { %1758 = vmatmul.mubr.msk.f32.gmra.mrb[40].mxu0 %vm1307_vm3, %v2192_v29 }
 0x31c   : > { %1766 = vmatmul.mubr.msk.f32.gmra.mrb[40].mxu1 %vm1307_vm3, %v2194_v30 }
 0x3d1   : > { %v1398_v31 = vpop.f32.mrb[26].mxu0 }
 0x3d2   : > { %v1539_v32 = vpop.f32.mrb[26].mxu1  ;;  %v1400_v50 = vpop.f32.mrb[27].mxu0 }
 0x3d3   : > { %v1586_v51 = vmul.f32 %v1539_v32, %v1398_v31  ;;  %v1541_v52 = vpop.f32.mrb[27].mxu1 }
 0x3d4   : > { %v1587_v53 = vmul.f32 %v1541_v52, %v1400_v50 }
 0x3d5   : > { %v1602_v54 = vmul.f32 %v1586_v51, %v2584_v33  ;;  %v1404_v55 = vpop.f32.mrb[28].mxu0 }
 0x3d6   : > { %v1603_v49 = vmul.f32 %v1587_v53, %v2552_v16  ;;  %v1545_v56 = vpop.f32.mrb[28].mxu1  ;;  %v1406_v57 = vpop.f32.mrb[29].mxu0 }
 0x3d7   : > { %1618 = vst [vmem:[%s2847_s19] sm:$0xff] %v1602_v54  ;;  %v1588_v58 = vmul.f32 %v1545_v56, %v1404_v55  ;;  %v1547_v59 = vpop.f32.mrb[29].mxu1 }
 0x3d8   : > { %1619 = vst [vmem:[%s2847_s19 + $0x8] sm:$0xff] %v1603_v49  ;;  %v1589_v60 = vmul.f32 %v1547_v59, %v1406_v57 }
 0x3d9   : > { %v1604_v61 = vmul.f32 %v1588_v58, %v2593_v35  ;;  %v1410_v33 = vpop.f32.mrb[30].mxu0 }
 0x3da   : > { %v1605_v62 = vmul.f32 %v1589_v60, %v2587_v34  ;;  %v1551_v16 = vpop.f32.mrb[30].mxu1  ;;  %v1412_v63 = vpop.f32.mrb[31].mxu0 }
 0x3db   : > { %1620 = vst [vmem:[%s2847_s19 + $0x10] sm:$0xff] %v1604_v61  ;;  %v1590_v0 = vmul.f32 %v1551_v16, %v1410_v33  ;;  %v1553_v1 = vpop.f32.mrb[31].mxu1 }
 0x3dc   : > { %1621 = vst [vmem:[%s2847_s19 + $0x18] sm:$0xff] %v1605_v62  ;;  %v1591_v2 = vmul.f32 %v1553_v1, %v1412_v63 }
 0x3dd   : > { %v1606_v3 = vmul.f32 %v1590_v0, %v2603_v37  ;;  %v1416_v4 = vpop.f32.mrb[32].mxu0 }
 0x3de   : > { %v1607_v5 = vmul.f32 %v1591_v2, %v2597_v36  ;;  %v1557_v6 = vpop.f32.mrb[32].mxu1  ;;  %v1418_v35 = vpop.f32.mrb[33].mxu0 }
 0x3df   : > { %1622 = vst [vmem:[%s2847_s19 + $0x20] sm:$0xff] %v1606_v3  ;;  %v1592_v48 = vmul.f32 %v1557_v6, %v1416_v4  ;;  %v1559_v34 = vpop.f32.mrb[33].mxu1 }
 0x3e0   : > { %1623 = vst [vmem:[%s2847_s19 + $0x28] sm:$0xff] %v1607_v5  ;;  %v1593_v7 = vmul.f32 %v1559_v34, %v1418_v35 }
 0x3e1   : > { %v1608_v8 = vmul.f32 %v1592_v48, %v2613_v39  ;;  %v1422_v9 = vpop.f32.mrb[34].mxu0 }
 0x3e2   : > { %v1609_v10 = vmul.f32 %v1593_v7, %v2607_v38  ;;  %v1563_v11 = vpop.f32.mrb[34].mxu1  ;;  %v1424_v37 = vpop.f32.mrb[35].mxu0 }
 0x3e3   : > { %1624 = vst [vmem:[%s2847_s19 + $0x30] sm:$0xff] %v1608_v8  ;;  %v1594_v12 = vmul.f32 %v1563_v11, %v1422_v9  ;;  %v1565_v36 = vpop.f32.mrb[35].mxu1 }
 0x3e4   : > { %1625 = vst [vmem:[%s2847_s19 + $0x38] sm:$0xff] %v1609_v10  ;;  %v1595_v13 = vmul.f32 %v1565_v36, %v1424_v37 }
 0x3e5   : > { %v1610_v14 = vmul.f32 %v1594_v12, %v2623_v41  ;;  %v1428_v15 = vpop.f32.mrb[36].mxu0 }
 0x3e6   : > { %v1611_v17 = vmul.f32 %v1595_v13, %v2617_v40  ;;  %v1569_v18 = vpop.f32.mrb[36].mxu1  ;;  %v1430_v39 = vpop.f32.mrb[37].mxu0 }
 0x3e7   : > { %1626 = vst [vmem:[%s2847_s19 + $0x40] sm:$0xff] %v1610_v14  ;;  %v1596_v19 = vmul.f32 %v1569_v18, %v1428_v15  ;;  %v1571_v38 = vpop.f32.mrb[37].mxu1 }
 0x3e8   : > { %1627 = vst [vmem:[%s2847_s19 + $0x48] sm:$0xff] %v1611_v17  ;;  %v1597_v20 = vmul.f32 %v1571_v38, %v1430_v39 }
 0x3e9   : > { %v1612_v22 = vmul.f32 %v1596_v19, %v2633_v43 }
 0x3ea   : > { %v1613_v21 = vmul.f32 %v1597_v20, %v2627_v42  ;;  %v1434_v23 = vpop.f32.mrb[38].mxu0 }
 0x3eb   : > { %1628 = vst [vmem:[%s2847_s19 + $0x50] sm:$0xff] %v1612_v22  ;;  %v1575_v41 = vpop.f32.mrb[38].mxu1  ;;  %v1436_v24 = vpop.f32.mrb[39].mxu0 }
 0x3ec   : > { %1629 = vst [vmem:[%s2847_s19 + $0x58] sm:$0xff] %v1613_v21  ;;  %v1598_v40 = vmul.f32 %v1575_v41, %v1434_v23  ;;  %v1577_v25 = vpop.f32.mrb[39].mxu1 }
 0x3ed   : > { %v1599_v26 = vmul.f32 %v1577_v25, %v1436_v24 }
 0x3ee   : > { %v1614_v27 = vmul.f32 %v1598_v40, %v2643_v45  ;;  %v1440_v28 = vpop.f32.mrb[40].mxu0 }
 0x3ef   : > { %v1615_v43 = vmul.f32 %v1599_v26, %v2637_v44  ;;  %v1581_v29 = vpop.f32.mrb[40].mxu1  ;;  %v1442_v42 = vpop.f32.mrb[41].mxu0 }
 0x3f0   : > { %1630 = vst [vmem:[%s2847_s19 + $0x60] sm:$0xff] %v1614_v27  ;;  %v1600_v30 = vmul.f32 %v1581_v29, %v1440_v28  ;;  %v1583_v31 = vpop.f32.mrb[41].mxu1 }
 0x3f1   : > { %1631 = vst [vmem:[%s2847_s19 + $0x68] sm:$0xff] %v1615_v43  ;;  %v1601_v32 = vmul.f32 %v1583_v31, %v1442_v42 }
 0x3f2   : > { %v1616_v50 = vmul.f32 %v1600_v30, %v2653_v47 }
 0x3f3   : > { %v1617_v44 = vmul.f32 %v1601_v32, %v2647_v46 }
 0x3f4   : > { %1632 = vst [vmem:[%s2847_s19 + $0x70] sm:$0xff] %v1616_v50 }
 0x3f5   : > { %1633 = vst [vmem:[%s2847_s19 + $0x78] sm:$0xff] %v1617_v44 }
 0x3f6   : > { %2208 = shalt.err (!%p2205_p3)
}
 0x3f7   : > { %s2209_s25 = scalar_lea.hbm %s2881_s16, 2048  ;;  %s2213_s29 = scalar_lea.hbm %s2942_s11, 4096 }
 0x3f8   : > { %p2210_p4 = scmp.ne.s32.totalorder %s2881_s16, %s2209_s25  ;;  %p2214_p9 = scmp.lt.u32.totalorder %s2881_s16, %s2942_s11 }
 0x3f9   : > { %p2215_p10 = scmp.lt.u32.totalorder %s2213_s29, %s2209_s25  ;;  %p2217_p12 = scmp.lt.u32.totalorder %s2209_s25, %s2881_s16 }
 0x3fa   : > { %p2211_p7 = pnand %p2210_p4, %p2364_p5 }
 0x3fb   : > { %p2216_p11 = por %p2215_p10, %p2214_p9 }
 0x3fc   : > { %p2212_p8 = pneg %p2211_p7 }
 0x3fd   : > { %p2218_p13 = por %p2217_p12, %p2216_p11 }
 0x3ff   : > { %p2219_p0 = pnand %p2218_p13, %p2212_p8 }
 0x401   : > { %2222 = shalt.err (!%p2219_p0)
}
 0x402   : > { %s2264_s15 = smov 256   ;;  %s2265_s22 = smov 16  }
 0x403   : > { %2084 = dma.vmem_to_hbm [thread:$0]  (%p2364_p5), %s2883_s30, 2048, %s2881_s16, %s2890_s21, %s2264_s15, %s2264_s15, %s2265_s22  }
 0x404 PF: > { %p2090_p1 = scmp.ge.s32.totalorder %s2257_s20, 2  ;;  %s1663_s24 = sand.u32 1, %s2245_s17  }
 0x405   : > { %s1664_s26 = scalar_lea.sflag [#allocation3], %s1663_s24 }
 0x406   : > { %p2087_p2 = pnand %p2090_p1, %p2368_p6 }
 0x408   : > { %2240 = dma.done.wait (!%p2087_p2), %s1664_s26, 2048  }
 0x409   : > { %2242 = vsyncadd (!%p2087_p2), %s1664_s26, 4294965248  ;;  %s2948_s25 = sld [smem:[#allocation5_spill]]  ;;  %s2949_s19 = sld [smem:[#allocation6_spill]] }
 0x40a   : > { %p21_p3 = scmp.ge.s32.totalorder %s2351_s23, 4   ;;  %s2950_s17 = smov %s2249_s18 }
 0x40b   : > { %s2952_s20 = smov %s2351_s23 }
 0x40c   :  { %23 = sbr.rel (!%p21_p3) target bundleno = 3 (0x3), region = 99 }
 0x40f   : > { %s2951_s18 = smov %s2948_s25 }
 0x413   :  { %1669 = vsyncpa [#allocation3], 1 }
 0x414   :  { %1671 = vsyncpa [#allocation3 + $0x1], 1 }

</bundles_post_ra>
